<compile_context>
chip_gen: v6e
topology: v6e:2x2x1
jax: 0.10.0
libtpu: 0.0.40
codegen_flags: <defaults>
</compile_context>

<pallas_src>
import jax
import jax.numpy as jnp
from jax import lax
from jax.experimental import pallas as pl
from jax.experimental.pallas import tpu as pltpu

HIDDEN = 32      # config['hidden_size']
VOCAB = 16       # config['vocab_size']  (embedding table has VOCAB + 1 rows)
MAX_LEN = 8      # config['max_length']
BATCH = 2
MARGIN = 1.0

_VMEM = pl.BlockSpec(memory_space=pltpu.MemorySpace.VMEM)


def _encode_rows(tok_col, emb_table, w, b):
    """Fused SentenceEncoder on stacked token rows.

    tok_col:   (N, 1)   int32 token ids, N = (#sentences) * MAX_LEN
    emb_table: (V, H)   f32 embedding table (row 0 zero => padding_idx=0)
    w:         (H, H)   f32 nn.Linear weight in PyTorch (out, in) layout
    b:         (1, H)   f32 bias
    returns    (N/MAX_LEN, H) f32 max-pooled sentence vectors.
    """
    n = tok_col.shape[0]
    v = emb_table.shape[0]

    # Fold nn.Linear into the table once per call (tiny V x H matmul on MXU):
    #   embedding(x) @ W.T == onehot(x) @ (E @ W.T)
    ew = lax.dot_general(emb_table.astype(jnp.bfloat16), w.astype(jnp.bfloat16),
                         dimension_numbers=(((1,), (1,)), ((), ())),
                         preferred_element_type=jnp.float32)            # (V, H) f32

    # Embedding gather as a one-hot matmul (exact row selection, f32).
    ids = lax.broadcasted_iota(jnp.int32, (n, v), 1)                    # (N, V)
    onehot = (tok_col == ids).astype(jnp.float32)                       # (N, V)
    y = jnp.dot(onehot, ew, preferred_element_type=jnp.float32)         # (N, H) f32

    # max_pool1d(x.transpose(1,2), L).squeeze() == max over the sequence dim.
    # N is a multiple of 8 (= MAX_LEN), so the leading-dim reshape is free.
    # Bias is constant across the sequence, so add it after the pool.
    y = y.reshape(n // MAX_LEN, MAX_LEN, HIDDEN)
    return jnp.max(y, axis=1) + b                                       # (N/L, H)


def encoder_kernel(tok_ref, emb_ref, w_ref, b_ref, out_ref):
    out_ref[...] = _encode_rows(tok_ref[...], emb_ref[...], w_ref[...],
                                b_ref[...]).astype(out_ref.dtype)


def triplet_kernel(tok_ref, emb_ref, w_ref, b_ref, loss_ref):
    # Tokens are stacked [anchor; positive; negative] along rows, so a single
    # batched encode covers all three branches.
    vecs = _encode_rows(tok_ref[...], emb_ref[...], w_ref[...], b_ref[...])  # (3B, H)
    bsz = vecs.shape[0] // 3
    va = vecs[0 * bsz:1 * bsz]
    vp = vecs[1 * bsz:2 * bsz]
    vn = vecs[2 * bsz:3 * bsz]

    # TripletLoss: relu(||a-p||^2 - ||a-n||^2 + margin).mean()   (all f32)
    dp = jnp.sum((va - vp) ** 2, axis=1, keepdims=True)                 # (B, 1)
    dn = jnp.sum((va - vn) ** 2, axis=1, keepdims=True)                 # (B, 1)
    losses = jnp.maximum(dp - dn + MARGIN, 0.0)                         # (B, 1)
    loss = jnp.sum(losses) * (1.0 / bsz)                                # scalar

    # Lane-dense store of the scalar result.
    loss_ref[...] = jnp.broadcast_to(loss, loss_ref.shape).astype(loss_ref.dtype)


def _cost_estimate(n_rows):
    v = VOCAB + 1
    flops = 2 * v * HIDDEN * HIDDEN + 2 * n_rows * v * HIDDEN
    bytes_accessed = (n_rows * 4                      # token ids
                      + v * HIDDEN * 4                # embedding table
                      + HIDDEN * HIDDEN * 4           # linear weight
                      + HIDDEN * 4                    # bias
                      + max(n_rows // MAX_LEN, 1) * HIDDEN * 4 + 512)   # outputs
    return pl.CostEstimate(flops=flops, transcendentals=0,
                           bytes_accessed=bytes_accessed)


def init_params(key):
    k1, k2, k3 = jax.random.split(key, 3)
    emb = jax.random.normal(k1, (VOCAB + 1, HIDDEN), jnp.float32) * 0.1
    emb = emb.at[0].set(0.0)                      # nn.Embedding(padding_idx=0)
    w = jax.random.normal(k2, (HIDDEN, HIDDEN), jnp.float32) / jnp.sqrt(HIDDEN)
    bias = jax.random.normal(k3, (HIDDEN,), jnp.float32) * 0.01
    return emb, w, bias


@jax.jit
def _encode_call(token_ids, emb, w, bias):
    bsz, seq = token_ids.shape
    tok_col = token_ids.reshape(bsz * seq, 1).astype(jnp.int32)
    b2 = bias.reshape(1, HIDDEN)
    return pl.pallas_call(
        encoder_kernel,
        out_shape=jax.ShapeDtypeStruct((bsz, HIDDEN), jnp.float32),
        in_specs=[_VMEM, _VMEM, _VMEM, _VMEM],
        out_specs=_VMEM,
        cost_estimate=_cost_estimate(bsz * seq),
    )(tok_col, emb, w, b2)


@jax.jit
def _triplet_call(anchor, positive, negative, emb, w, bias):
    bsz, seq = anchor.shape
    toks = jnp.concatenate([anchor, positive, negative], axis=0)        # (3B, L)
    tok_col = toks.reshape(3 * bsz * seq, 1).astype(jnp.int32)
    b2 = bias.reshape(1, HIDDEN)
    out = pl.pallas_call(
        triplet_kernel,
        out_shape=jax.ShapeDtypeStruct((1, 128), jnp.float32),
        in_specs=[_VMEM, _VMEM, _VMEM, _VMEM],
        out_specs=_VMEM,
        cost_estimate=_cost_estimate(3 * bsz * seq),
    )(tok_col, emb, w, b2)
    return out[0, 0]


def siamese_forward(anchor, positive=None, negative=None, *, params):
    """Mirrors SiameseNetwork.forward."""
    emb, w, bias = params
    if positive is not None and negative is not None:
        return _triplet_call(anchor, positive, negative, emb, w, bias)
    return _encode_call(anchor, emb, w, bias)


if __name__ == "__main__":
    key = jax.random.PRNGKey(0)
    kparam, ka, kp, kn = jax.random.split(key, 4)
    params = init_params(kparam)

    anchor = jax.random.randint(ka, (BATCH, MAX_LEN), 0, VOCAB + 1, dtype=jnp.int32)
    positive = jax.random.randint(kp, (BATCH, MAX_LEN), 0, VOCAB + 1, dtype=jnp.int32)
    negative = jax.random.randint(kn, (BATCH, MAX_LEN), 0, VOCAB + 1, dtype=jnp.int32)

    loss = siamese_forward(anchor, positive, negative, params=params)   # triplet path
    vec = siamese_forward(anchor, params=params)                        # encode-only path
    jax.block_until_ready((loss, vec))
    print("KERNEL_OK")
</pallas_src>

<mosaic_0001>
module attributes {stable_mosaic.version = 11 : i64} {
  func.func @triplet_kernel(%arg0: memref<48x1xi32, #tpu.memory_space<vmem>>, %arg1: memref<17x32xf32, #tpu.memory_space<vmem>>, %arg2: memref<32x32xf32, #tpu.memory_space<vmem>>, %arg3: memref<1x32xf32, #tpu.memory_space<vmem>>, %arg4: memref<1x128xf32, #tpu.memory_space<vmem>>) attributes {dimension_semantics = [], scalar_prefetch = 0 : i64, scratch_operands = 0 : i64, tpu.core_type = #tpu.core_type<tc>} {
    %c0 = arith.constant 0 : index
    %c0_0 = arith.constant 0 : index
    %0 = vector.load %arg0[%c0, %c0_0] : memref<48x1xi32, #tpu.memory_space<vmem>>, vector<48x1xi32>
    %c0_1 = arith.constant 0 : index
    %c0_2 = arith.constant 0 : index
    %1 = vector.load %arg1[%c0_1, %c0_2] : memref<17x32xf32, #tpu.memory_space<vmem>>, vector<17x32xf32>
    %c0_3 = arith.constant 0 : index
    %c0_4 = arith.constant 0 : index
    %2 = vector.load %arg2[%c0_3, %c0_4] : memref<32x32xf32, #tpu.memory_space<vmem>>, vector<32x32xf32>
    %c0_5 = arith.constant 0 : index
    %c0_6 = arith.constant 0 : index
    %3 = vector.load %arg3[%c0_5, %c0_6] : memref<1x32xf32, #tpu.memory_space<vmem>>, vector<1x32xf32>
    %4 = arith.truncf %1 : vector<17x32xf32> to vector<17x32xbf16>
    %5 = arith.truncf %2 : vector<32x32xf32> to vector<32x32xbf16>
    %cst = arith.constant dense<0.000000e+00> : vector<17x32xf32>
    %6 = tpu.matmul %4, %5, %cst {dimension_numbers = #tpu.dot_dimension_numbers<[1], [1], [0], [0], [0, 0, 1, 0], [], []>} : vector<17x32xbf16>, vector<32x32xbf16>, vector<17x32xf32> -> vector<17x32xf32>
    %7 = tpu.iota {dimensions = array<i32: 1>} : vector<48x17xi32>
    %8 = vector.broadcast %0 : vector<48x1xi32> to vector<48x17xi32>
    %9 = arith.cmpi eq, %8, %7 : vector<48x17xi32>
    %10 = arith.extui %9 : vector<48x17xi1> to vector<48x17xi32>
    %11 = arith.sitofp %10 : vector<48x17xi32> to vector<48x17xf32>
    %cst_7 = arith.constant dense<0.000000e+00> : vector<48x32xf32>
    %12 = tpu.matmul %11, %6, %cst_7 {dimension_numbers = #tpu.dot_dimension_numbers<[1], [0], [0], [1], [0, 0, 1, 1], [], []>} : vector<48x17xf32>, vector<17x32xf32>, vector<48x32xf32> -> vector<48x32xf32>
    %13 = vector.shape_cast %12 : vector<48x32xf32> to vector<6x8x32xf32>
    %cst_8 = arith.constant dense<0xFF800000> : vector<6x32xf32>
    %14 = vector.multi_reduction <maximumf>, %13, %cst_8 [1] : vector<6x8x32xf32> to vector<6x32xf32>
    %15 = vector.broadcast %3 : vector<1x32xf32> to vector<6x32xf32>
    %16 = arith.addf %14, %15 : vector<6x32xf32>
    %17 = vector.extract_strided_slice %16 {offsets = [0, 0], sizes = [2, 32], strides = [1, 1]} : vector<6x32xf32> to vector<2x32xf32>
    %18 = vector.extract_strided_slice %16 {offsets = [2, 0], sizes = [2, 32], strides = [1, 1]} : vector<6x32xf32> to vector<2x32xf32>
    %19 = vector.extract_strided_slice %16 {offsets = [4, 0], sizes = [2, 32], strides = [1, 1]} : vector<6x32xf32> to vector<2x32xf32>
    %20 = arith.subf %17, %18 : vector<2x32xf32>
    %21 = arith.mulf %20, %20 : vector<2x32xf32>
    %cst_9 = arith.constant dense<0.000000e+00> : vector<2xf32>
    %22 = vector.multi_reduction <add>, %21, %cst_9 [1] : vector<2x32xf32> to vector<2xf32>
    %23 = vector.shape_cast %22 : vector<2xf32> to vector<2x1xf32>
    %24 = arith.subf %17, %19 : vector<2x32xf32>
    %25 = arith.mulf %24, %24 : vector<2x32xf32>
    %cst_10 = arith.constant dense<0.000000e+00> : vector<2xf32>
    %26 = vector.multi_reduction <add>, %25, %cst_10 [1] : vector<2x32xf32> to vector<2xf32>
    %27 = vector.shape_cast %26 : vector<2xf32> to vector<2x1xf32>
    %28 = arith.subf %23, %27 : vector<2x1xf32>
    %cst_11 = arith.constant 1.000000e+00 : f32
    %29 = vector.broadcast %cst_11 : f32 to vector<2x1xf32>
    %30 = arith.addf %28, %29 : vector<2x1xf32>
    %cst_12 = arith.constant 0.000000e+00 : f32
    %31 = vector.broadcast %cst_12 : f32 to vector<2x1xf32>
    %32 = arith.maximumf %30, %31 : vector<2x1xf32>
    %33 = vector.shape_cast %32 : vector<2x1xf32> to vector<1x2x1xf32>
    %cst_13 = arith.constant dense<0.000000e+00> : vector<1xf32>
    %34 = vector.multi_reduction <add>, %33, %cst_13 [1, 2] : vector<1x2x1xf32> to vector<1xf32>
    %35 = vector.shape_cast %34 : vector<1xf32> to vector<1x1x1xf32>
    %36 = vector.extract %35[0, 0, 0] : f32 from vector<1x1x1xf32>
    %cst_14 = arith.constant 5.000000e-01 : f32
    %37 = arith.mulf %36, %cst_14 : f32
    %38 = vector.broadcast %37 : f32 to vector<1x128xf32>
    %c0_15 = arith.constant 0 : index
    %c0_16 = arith.constant 0 : index
    %39 = vector.load %arg4[%c0_15, %c0_16] : memref<1x128xf32, #tpu.memory_space<vmem>>, vector<1x128xf32>
    tpu.vector_store %arg4[%c0_15, %c0_16], %38 {strides = array<i32>} : memref<1x128xf32, #tpu.memory_space<vmem>>, vector<1x128xf32>,
    return
  }
}

</mosaic_0001>

<bundles_post_ra>
// kernel: _triplet_call.1
= control target key start
LH: loop header
LB: loop body
LE: loop exit
PB: predicated region body
PF: predicated region fallthrough
CT: control target
= control target key end

     0   :  { %vm37_vm0 = vcmask 261120   ;;  %v448_v7 = vmov 0   ;;  %s539_s0 = inlined_call_operand.vmem [shape: s32[48,1], index: 0, kind: input, shape index: {}]   ;;  %s540_s1 = inlined_call_operand.vmem [shape: f32[17,32], index: 1, kind: input, shape index: {}]   ;;  %s541_s2 = inlined_call_operand.vmem [shape: f32[32,32], index: 2, kind: input, shape index: {}]   ;;  %s542_s3 = inlined_call_operand.vmem [shape: f32[1,32], index: 3, kind: input, shape index: {}]   ;;  %s543_s4 = inlined_call_operand.hbm [shape: f32[1,128], index: 4, kind: output, shape index: {}]  }
   0x1   :  { %v30_v0 = vld [vmem:[%s541_s2 + $0x10] sm:$0xff]  ;;  %v31_v1 = vld [vmem:[%s541_s2 + $0x18] sm:$0xff]  ;;  %v28_v2 = vld [vmem:[%s541_s2] sm:$0xff]  ;;  %424 = vset.pattern.permute.xlu0 %v448_v7  ;;  %425 = vset.pattern.permute.xlu1 %v448_v7 }
   0x2   :  { %v36_v3 = vpack.c.bf16 %v31_v1, %v30_v0  ;;  %v29_v4 = vld [vmem:[%s541_s2 + $0x8] sm:$0xff]  ;;  %v25_v5 = vld [vmem:[%s540_s1] sm:$0xff]  ;;  %v21_v11 = vld [vmem:[%s539_s0 + $0x10] sm:$0xff] }
   0x3   :  { %v26_v6 = vld [vmem:[%s540_s1 + $0x8] sm:$0xff]  ;;  %v35_v8 = vpack.c.bf16 %v29_v4, %v28_v2  ;;  %v19_v10 = vld [vmem:[%s539_s0] sm:$0xff] }
   0x4   :  { %v33_v9 = vpack.c.bf16 %v26_v6, %v25_v5  ;;  %417 = vmatprep.subr.msk.bf16.mxu0 %vm37_vm0, %v36_v3  ;;  %v48_v12 = vsel %vm37_vm0, %v36_v3, 0  ;;  %101 = vperm.xlu0 %424, %v19_v10   ;;  %v20_v13 = vld [vmem:[%s539_s0 + $0x8] sm:$0xff] }
   0x5   :  { %395 = vmatpush3.bf16.xpose.msra.mxu0 %v48_v12 }
   0x6   :  { %398 = vmatprep.mubr.msk.bf16.mxu0 %vm37_vm0, %v33_v9 }
   0x7   :  { %9 = vsyncpa [#allocation3], 0  ;;  %418 = vmatprep.subr.msk.bf16.mxu0 %vm37_vm0, %v35_v8  ;;  %107 = vperm.xlu1 %425, %v21_v11   ;;  %v22_v14 = vld [vmem:[%s539_s0 + $0x18] sm:$0xff]  ;;  %v23_v15 = vld [vmem:[%s539_s0 + $0x20] sm:$0xff]  ;;  %v45_v16 = vsel %vm37_vm0, %v35_v8, 0  ;;  %v98_v20 = vlaneseq  ;;  %vm136_vm1 = vcmask 138240  }
   0x8   :  { %104 = vperm.xlu0 %424, %v20_v13   ;;  %v24_v17 = vld [vmem:[%s539_s0 + $0x28] sm:$0xff]  ;;  %v27_v18 = vld [vmem:[%s540_s1 + $0x10] sm:$0x1]  ;;  %v449_v24 = vmov 0.0   ;;  %vm155_vm8 = vcmask 1040384   ;;  %vm315_vm9 = vcmask 1041409  }
   0x9   :  { %v34_v19 = vpack.c.bf16 %v27_v18, %v27_v18  ;;  %v99_v21 = vand.u32 127, %v98_v20  ;;  %v380_v10 = vld [vmem:[%s542_s3] ss:$0 sm:$0xff]  ;;  %vm318_vm10 = vcmask 254976   ;;  %vm337_vm11 = vcmask 1024   ;;  %s450_s3 = smov [#allocation2]  }
   0xa   :  { %s357_s14 = sshll.u32 %s450_s3, 4  ;;  %s358_s14 = int_to_ptr.vmem [resolvable:$true] %s357_s14 }
   0xb   :  { %110 = vperm.xlu1 %425, %v22_v14   ;;  %s426_s17 = scalar_lea.vmem %s358_s14, 16  ;;  %s430_s18 = scalar_lea.vmem %s358_s14, 32 }
   0xc   :  { %113 = vperm.xlu0 %424, %v23_v15   ;;  %p427_p0 = scmp.ne.s32.totalorder %s358_s14, %s426_s17  ;;  %p431_p1 = scmp.lt.s32.totalorder %s358_s14, %s358_s14 }
   0xd   :  { %397 = vmatpush3.bf16.xpose.msra.mxu0 %v45_v16  ;;  %p432_p2 = scmp.lt.s32.totalorder %s430_s18, %s426_s17 }
   0xf   :  { %116 = vperm.xlu1 %425, %v24_v17   ;;  %p433_p3 = por %p432_p2, %p431_p1 }
  0x11   :  { %p434_p4 = pnand %p433_p3, %p427_p0 }
  0x14   :  { %399 = vmatmul.mubr.msk.bf16.vlgmr.msra.gmra.mxu0 %vm37_vm0, %v34_v19 }
  0x7f   :  { %v102_v22 = vpop.permute.xlu0 %101 }
  0x80   :  { %vm118_vm2 = vcmp.eq.s32.totalorder %v102_v22, %v99_v21 }
  0x81   :  { %v367_v25 = vsel %vm118_vm2, 1.0, %v449_v24 }
  0x82   :  { %v108_v23 = vpop.permute.xlu1 %107  ;;  %408 = vmatprep.mubr.msk.f32.mxu1 %vm136_vm1, %v367_v25 }
  0x83   :  { %vm120_vm3 = vcmp.eq.s32.totalorder %v108_v23, %v99_v21  ;;  %v105_v27 = vpop.permute.xlu0 %104 }
  0x84   :  { %v369_v26 = vsel %vm120_vm3, 1.0, %v449_v24  ;;  %vm119_vm4 = vcmp.eq.s32.totalorder %v105_v27, %v99_v21 }
  0x85   :  { %v368_v28 = vsel %vm119_vm4, 1.0, %v449_v24 }
  0x86   :  { %v111_v29 = vpop.permute.xlu1 %110 }
  0x87   :  { %vm121_vm5 = vcmp.eq.s32.totalorder %v111_v29, %v99_v21  ;;  %v114_v31 = vpop.permute.xlu0 %113 }
  0x88   :  { %v370_v30 = vsel %vm121_vm5, 1.0, %v449_v24  ;;  %vm122_vm6 = vcmp.eq.s32.totalorder %v114_v31, %v99_v21 }
  0x89   :  { %v371_v32 = vsel %vm122_vm6, 1.0, %v449_v24 }
  0x8a   :  { %v117_v33 = vpop.permute.xlu1 %116 }
  0x8b   :  { %vm123_vm7 = vcmp.eq.s32.totalorder %v117_v33, %v99_v21 }
  0x8c   :  { %v372_v34 = vsel %vm123_vm7, 1.0, %v449_v24 }
  0xd4   :  { %v400_v35 = vpop.f32.mrf.mxu0 }
  0xd5   :  { %402 = vmatprep.subr.msk.mxu1 %vm155_vm8, %v400_v35 }
  0xd6   :  { %v84_v36 = vpop.f32.mrf.mxu0  ;;  %403 = vmatpush3.msk.msra.mxu1 %vm155_vm8, %v400_v35 }
  0xd8   :  { %v401_v37 = vpop.f32.mrf.mxu0 }
  0xda   :  { %v87_v38 = vpop.f32.mrf.mxu0 }
  0xdb   :  { %404 = vmatprep.subr.mxu1 %v87_v38 }
  0xdc   :  { %405 = vmatpush3.msra.mxu1 %v87_v38 }
  0xdd   :  { %406 = vmatprep.subr.mxu1 %v84_v36 }
  0xde   :  { %407 = vmatpush3.msra.mxu1 %v84_v36 }
  0xdf   :  { %409 = vmatmul.mubr.msk.f32.vlgmr.msra.gmra.mxu1 %vm136_vm1, %v368_v28 }
  0xe0   :  { %411 = vmatprep.mubr.msk.f32.mxu1 %vm136_vm1, %v369_v26 }
  0xe3   :  { %412 = vmatmul.mubr.msk.f32.gmra.mxu1 %vm136_vm1, %v370_v30 }
  0xe4   :  { %414 = vmatprep.mubr.msk.f32.mxu1 %vm136_vm1, %v371_v32 }
  0xe7   :  { %415 = vmatmul.mubr.msk.f32.gmra.mxu1 %vm136_vm1, %v372_v34 }
 0x19f   :  { %v410_v39 = vpop.f32.mrf.mxu1 }
 0x1a0   :  { %v261_v40 = vsel %vm37_vm0, %v410_v39, -inf }
 0x1a1   :  { %v262_v41 = vrot.slane %v261_v40, 4  ;;  %v225_v42 = vpop.f32.mrf.mxu1 }
 0x1a2   :  { %v254_v43 = vsel %vm37_vm0, %v225_v42, -inf }
 0x1a3   :  { %v263_v44 = vmax.f32 %v261_v40, %v262_v41  ;;  %v255_v45 = vrot.slane %v254_v43, 4  ;;  %v413_v46 = vpop.f32.mrf.mxu1 }
 0x1a4   :  { %v275_v47 = vsel %vm37_vm0, %v413_v46, -inf }
 0x1a5   :  { %v264_v48 = vrot.slane %v263_v44, 2  ;;  %v256_v49 = vmax.f32 %v254_v43, %v255_v45  ;;  %v276_v50 = vrot.slane %v275_v47, 4  ;;  %v235_v51 = vpop.f32.mrf.mxu1 }
 0x1a6   :  { %v268_v52 = vsel %vm37_vm0, %v235_v51, -inf }
 0x1a7   :  { %v265_v53 = vmax.f32 %v263_v44, %v264_v48  ;;  %v257_v54 = vrot.slane %v256_v49, 2  ;;  %v277_v55 = vmax.f32 %v275_v47, %v276_v50  ;;  %v269_v56 = vrot.slane %v268_v52, 4  ;;  %v416_v57 = vpop.f32.mrf.mxu1 }
 0x1a8   :  { %v289_v58 = vsel %vm37_vm0, %v416_v57, -inf }
 0x1a9   :  { %v266_v59 = vrot.slane %v265_v53, 1  ;;  %v258_v60 = vmax.f32 %v256_v49, %v257_v54  ;;  %v278_v61 = vrot.slane %v277_v55, 2  ;;  %v270_v62 = vmax.f32 %v268_v52, %v269_v56  ;;  %v245_v63 = vpop.f32.mrf.mxu1 }
 0x1aa   :  { %v290_v0 = vrot.slane %v289_v58, 4  ;;  %v282_v1 = vsel %vm37_vm0, %v245_v63, -inf }
 0x1ab   :  { %v259_v2 = vrot.slane %v258_v60, 1  ;;  %v279_v3 = vmax.f32 %v277_v55, %v278_v61  ;;  %v271_v4 = vrot.slane %v270_v62, 2  ;;  %v283_v6 = vrot.slane %v282_v1, 4 }
 0x1ac   :  { %v291_v5 = vmax.f32 %v289_v58, %v290_v0  ;;  %v267_v7 = vmax.f32 %v265_v53, %v266_v59 }
 0x1ad   :  { %v280_v8 = vrot.slane %v279_v3, 1  ;;  %v272_v9 = vmax.f32 %v270_v62, %v271_v4  ;;  %v284_v12 = vmax.f32 %v282_v1, %v283_v6  ;;  %v260_v13 = vmax.f32 %v258_v60, %v259_v2 }
 0x1ae   :  { %v292_v11 = vrot.slane %v291_v5, 2  ;;  %v303_v18 = vadd.f32 %v380_v10, %v267_v7 }
 0x1af   :  { %v281_v14 = vmax.f32 %v279_v3, %v280_v8  ;;  %v273_v15 = vrot.slane %v272_v9, 1  ;;  %v285_v17 = vrot.slane %v284_v12, 2  ;;  %v302_v23 = vadd.f32 %v380_v10, %v260_v13 }
 0x1b0   :  { %v293_v16 = vmax.f32 %v291_v5, %v292_v11 }
 0x1b1   :  { %v305_v19 = vadd.f32 %v380_v10, %v281_v14  ;;  %v274_v20 = vmax.f32 %v272_v9, %v273_v15  ;;  %v286_v22 = vmax.f32 %v284_v12, %v285_v17 }
 0x1b2   :  { %v294_v21 = vrot.slane %v293_v16, 1 }
 0x1b3   :  { %v304_v24 = vadd.f32 %v380_v10, %v274_v20  ;;  %v309_v25 = vsub.f32 %v303_v18, %v305_v19  ;;  %v287_v27 = vrot.slane %v286_v22, 1 }
 0x1b4   :  { %v295_v26 = vmax.f32 %v293_v16, %v294_v21 }
 0x1b5   :  { %v308_v28 = vsub.f32 %v302_v23, %v304_v24  ;;  %v311_v29 = vmul.f32 %v309_v25, %v309_v25  ;;  %v288_v31 = vmax.f32 %v286_v22, %v287_v27 }
 0x1b6   :  { %v307_v30 = vadd.f32 %v380_v10, %v295_v26 }
 0x1b7   :  { %v310_v32 = vmul.f32 %v308_v28, %v308_v28  ;;  %v314_v33 = vrot.slane %v311_v29, 7  ;;  %v306_v34 = vadd.f32 %v380_v10, %v288_v31 }
 0x1b8   :  { %v323_v35 = vsub.f32 %v303_v18, %v307_v30 }
 0x1b9   :  { %v316_v36 = vsel %vm315_vm9, %v314_v33, %v310_v32  ;;  %v322_v38 = vsub.f32 %v302_v23, %v306_v34 }
 0x1ba   :  { %v319_v37 = vsel %vm318_vm10, %v316_v36, 0.0  ;;  %v325_v39 = vmul.f32 %v323_v35, %v323_v35 }
 0x1bb   :  { %320 = vadd.xlane.f32.xlu0 %v319_v37  ;;  %v324_v40 = vmul.f32 %v322_v38, %v322_v38 }
 0x1bc   :  { %v328_v41 = vrot.slane %v325_v39, 7 }
 0x1be   :  { %v329_v42 = vsel %vm315_vm9, %v328_v41, %v324_v40 }
 0x1bf   :  { %v331_v43 = vsel %vm318_vm10, %v329_v42, 0.0 }
 0x1c0   :  { %332 = vadd.xlane.f32.xlu1 %v331_v43 }
 0x244   :  { %v321_v44 = vpop.xlane.xlu0 %320 }
 0x249   :  { %v333_v45 = vpop.xlane.xlu1 %332 }
 0x24a   :  { %v334_v46 = vsub.f32 %v321_v44, %v333_v45 }
 0x24c   :  { %v335_v47 = vadd.f32 1.0, %v334_v46 }
 0x24e   :  { %v336_v48 = vmax.f32 %v335_v47, 0.0 }
 0x250   :  { %v338_v49 = vsel %vm337_vm11, %v336_v48, 0.0 }
 0x251   :  { %339 = vadd.xlane.f32.xlu0 %v338_v49 }
 0x2da   :  { %v340_v50 = vpop.xlane.xlu0 %339 }
 0x2db   :  { %v341_v51 = vrot.slane %v340_v50, 4 }
 0x2dd   :  { %v342_v52 = vadd.f32 %v341_v51, %v340_v50 }
 0x2df   :  { %v343_v53 = vrot.slane %v342_v52, 2 }
 0x2e1   :  { %v344_v54 = vadd.f32 %v343_v53, %v342_v52 }
 0x2e3   :  { %v345_v55 = vrot.slane %v344_v54, 1 }
 0x2e5   :  { %v346_v56 = vadd.f32 %v345_v55, %v344_v54 }
 0x2e7   :  { %419 = vpush %v346_v56 }
 0x318   :  { %s420_s15 = spop %419 }
 0x319   :  { %s348_s16 = smul.f32 0.5, %s420_s15 }
 0x31b   :  { %v349_v57 = vstv %s348_s16 }
 0x31c   :  { %350 = vst [vmem:[#allocation2] sm:$0x1] %v349_v57 }
 0x31d   :  { %437 = shalt.err (!%p434_p4)
}
 0x31e   :  { %360 = dma.vmem_to_hbm [thread:$0]  %s358_s14, 16, %s543_s4, [#allocation3]  }
 0x31f   :  { %446 = dma.done.wait [#allocation3], 16  }
 0x320   :  { %447 = vsyncadd [#allocation3], 4294967280 }
 0x321   :  { %364 = vsyncpa [#allocation3], 1 }

</bundles_post_ra>
